<compile_context>
chip_gen: v5e
topology: v5e:2x2
jax: 0.10.0
libtpu: 0.0.40
codegen_flags: <defaults>
</compile_context>

<pallas_src>
import functools

import jax
import jax.numpy as jnp
from jax.experimental import pallas as pl
from jax.experimental.pallas import tpu as pltpu


def _round_up(n, m):
    return ((n + m - 1) // m) * m


def _mlp_kernel(x_ref, w1_ref, b1_ref, w2_ref, b2_ref, w3_ref, b3_ref, o_ref):
    # fc1: bf16 operands on the MXU, f32 accumulation; epilogue in f32.
    h1 = jnp.dot(x_ref[...], w1_ref[...], preferred_element_type=jnp.float32)
    h1 = jnp.maximum(h1 + b1_ref[...], 0.0)
    # fc2: re-narrow the activation so the MXU stays on the bf16 path.
    h2 = jnp.dot(h1.astype(jnp.bfloat16), w2_ref[...],
                 preferred_element_type=jnp.float32)
    h2 = jnp.maximum(h2 + b2_ref[...], 0.0)
    # fc3 (logits, no activation).
    h3 = jnp.dot(h2.astype(jnp.bfloat16), w3_ref[...],
                 preferred_element_type=jnp.float32)
    o_ref[...] = (h3 + b3_ref[...]).astype(o_ref.dtype)


@functools.partial(jax.jit, static_argnames=("tile_b",))
def mushroom_classifier_forward(x, w1, b1, w2, b2, w3, b3, *, tile_b=8192):
    """Forward pass of MushroomClassifier.

    x: [B, input_size] float32
    w1: [input_size, 64], b1: [1, 64]
    w2: [64, 32],         b2: [1, 32]
    w3: [32, 2],          b3: [1, 2]
    returns: [B, 2] float32 logits
    """
    B, F = x.shape
    out_dim = w3.shape[1]

    # Sublane-aligned batch tile, no larger than (padded) B; pad B up to a multiple.
    tb = min(tile_b, _round_up(B, 8))
    Bp = _round_up(B, tb)

    # bf16 on the DMA / MXU-operand path; biases stay f32 for the f32 epilogue.
    x_bf = x.astype(jnp.bfloat16)
    if Bp != B:
        x_bf = jnp.pad(x_bf, ((0, Bp - B), (0, 0)))
    w1b = w1.astype(jnp.bfloat16)
    w2b = w2.astype(jnp.bfloat16)
    w3b = w3.astype(jnp.bfloat16)

    # Weights/biases: full-array blocks, resident across the whole batch grid.
    resident = lambda a: pl.BlockSpec(a.shape, lambda i: (0,) * a.ndim)

    out = pl.pallas_call(
        _mlp_kernel,
        out_shape=jax.ShapeDtypeStruct((Bp, out_dim), jnp.float32),
        grid=(Bp // tb,),
        in_specs=[
            pl.BlockSpec((tb, F), lambda i: (i, 0)),   # streamed x tiles
            resident(w1b), resident(b1),
            resident(w2b), resident(b2),
            resident(w3b), resident(b3),
        ],
        out_specs=pl.BlockSpec((tb, out_dim), lambda i: (i, 0)),
        compiler_params=pltpu.CompilerParams(
            dimension_semantics=("parallel",)),
    )(x_bf, w1b, b1, w2b, b2, w3b, b3)

    return out[:B] if Bp != B else out


def init_params(input_size, key):
    """Deterministic PyTorch-style (Kaiming-uniform-ish) init."""
    def linear_init(key, fan_in, fan_out):
        kw, kb = jax.random.split(key)
        bound = 1.0 / jnp.sqrt(fan_in)
        w = jax.random.uniform(kw, (fan_in, fan_out), jnp.float32, -bound, bound)
        b = jax.random.uniform(kb, (1, fan_out), jnp.float32, -bound, bound)
        return w, b

    k1, k2, k3 = jax.random.split(key, 3)
    w1, b1 = linear_init(k1, input_size, 64)
    w2, b2 = linear_init(k2, 64, 32)
    w3, b3 = linear_init(k3, 32, 2)
    return w1, b1, w2, b2, w3, b3


if __name__ == "__main__":
    key = jax.random.PRNGKey(0)
    k_in, k_param = jax.random.split(key)

    batch = 8
    input_size = 32  # number of (one-hot encoded) mushroom features

    x = jax.random.normal(k_in, (batch, input_size), jnp.float32)
    params = init_params(input_size, k_param)

    logits = mushroom_classifier_forward(x, *params)
    jax.block_until_ready(logits)

    # Reference in plain JAX with the same bf16 operand quantization, f32 math.
    w1, b1, w2, b2, w3, b3 = params
    q = lambda a: a.astype(jnp.bfloat16).astype(jnp.float32)
    h = jnp.maximum(q(x) @ q(w1) + b1, 0.0)
    h = jnp.maximum(q(h) @ q(w2) + b2, 0.0)
    ref = q(h) @ q(w3) + b3

    assert logits.shape == (batch, 2)
    assert jnp.allclose(logits, ref, atol=1e-2, rtol=1e-2), (
        float(jnp.max(jnp.abs(logits - ref))))

    print("KERNEL_OK")
</pallas_src>

<mosaic_0001>
module attributes {stable_mosaic.version = 11 : i64} {
  func.func @_mlp_kernel(%arg0: i32, %arg1: memref<8x32xbf16, #tpu.memory_space<vmem>>, %arg2: memref<32x64xbf16, #tpu.memory_space<vmem>>, %arg3: memref<1x64xf32, #tpu.memory_space<vmem>>, %arg4: memref<64x32xbf16, #tpu.memory_space<vmem>>, %arg5: memref<1x32xf32, #tpu.memory_space<vmem>>, %arg6: memref<32x2xbf16, #tpu.memory_space<vmem>>, %arg7: memref<1x2xf32, #tpu.memory_space<vmem>>, %arg8: memref<8x2xf32, #tpu.memory_space<vmem>>) attributes {dimension_semantics = [#tpu.dimension_semantics<parallel>], iteration_bounds = array<i64: 1>, scalar_prefetch = 0 : i64, scratch_operands = 0 : i64, tpu.core_type = #tpu.core_type<tc>, window_params = [{transform_indices = @transform_0, window_bounds = array<i64: 8, 32>}, {pipeline_mode = #tpu.pipeline_mode<synchronous>, transform_indices = @transform_1, window_bounds = array<i64: 32, 64>}, {pipeline_mode = #tpu.pipeline_mode<synchronous>, transform_indices = @transform_2, window_bounds = array<i64: 1, 64>}, {pipeline_mode = #tpu.pipeline_mode<synchronous>, transform_indices = @transform_3, window_bounds = array<i64: 64, 32>}, {pipeline_mode = #tpu.pipeline_mode<synchronous>, transform_indices = @transform_4, window_bounds = array<i64: 1, 32>}, {pipeline_mode = #tpu.pipeline_mode<synchronous>, transform_indices = @transform_5, window_bounds = array<i64: 32, 2>}, {pipeline_mode = #tpu.pipeline_mode<synchronous>, transform_indices = @transform_6, window_bounds = array<i64: 1, 2>}, {transform_indices = @transform_7, window_bounds = array<i64: 8, 2>}]} {
    %c0 = arith.constant 0 : index
    %c0_0 = arith.constant 0 : index
    %0 = vector.load %arg1[%c0, %c0_0] : memref<8x32xbf16, #tpu.memory_space<vmem>>, vector<8x32xbf16>
    %c0_1 = arith.constant 0 : index
    %c0_2 = arith.constant 0 : index
    %1 = vector.load %arg2[%c0_1, %c0_2] : memref<32x64xbf16, #tpu.memory_space<vmem>>, vector<32x64xbf16>
    %cst = arith.constant dense<0.000000e+00> : vector<8x64xf32>
    %2 = tpu.matmul %0, %1, %cst {dimension_numbers = #tpu.dot_dimension_numbers<[1], [0], [0], [1], [0, 0, 1, 1], [], []>} : vector<8x32xbf16>, vector<32x64xbf16>, vector<8x64xf32> -> vector<8x64xf32>
    %c0_3 = arith.constant 0 : index
    %c0_4 = arith.constant 0 : index
    %3 = vector.load %arg3[%c0_3, %c0_4] : memref<1x64xf32, #tpu.memory_space<vmem>>, vector<1x64xf32>
    %4 = vector.broadcast %3 : vector<1x64xf32> to vector<8x64xf32>
    %5 = arith.addf %2, %4 : vector<8x64xf32>
    %cst_5 = arith.constant 0.000000e+00 : f32
    %6 = vector.broadcast %cst_5 : f32 to vector<8x64xf32>
    %7 = arith.maximumf %5, %6 : vector<8x64xf32>
    %8 = arith.truncf %7 : vector<8x64xf32> to vector<8x64xbf16>
    %c0_6 = arith.constant 0 : index
    %c0_7 = arith.constant 0 : index
    %9 = vector.load %arg4[%c0_6, %c0_7] : memref<64x32xbf16, #tpu.memory_space<vmem>>, vector<64x32xbf16>
    %cst_8 = arith.constant dense<0.000000e+00> : vector<8x32xf32>
    %10 = tpu.matmul %8, %9, %cst_8 {dimension_numbers = #tpu.dot_dimension_numbers<[1], [0], [0], [1], [0, 0, 1, 1], [], []>} : vector<8x64xbf16>, vector<64x32xbf16>, vector<8x32xf32> -> vector<8x32xf32>
    %c0_9 = arith.constant 0 : index
    %c0_10 = arith.constant 0 : index
    %11 = vector.load %arg5[%c0_9, %c0_10] : memref<1x32xf32, #tpu.memory_space<vmem>>, vector<1x32xf32>
    %12 = vector.broadcast %11 : vector<1x32xf32> to vector<8x32xf32>
    %13 = arith.addf %10, %12 : vector<8x32xf32>
    %cst_11 = arith.constant 0.000000e+00 : f32
    %14 = vector.broadcast %cst_11 : f32 to vector<8x32xf32>
    %15 = arith.maximumf %13, %14 : vector<8x32xf32>
    %16 = arith.truncf %15 : vector<8x32xf32> to vector<8x32xbf16>
    %c0_12 = arith.constant 0 : index
    %c0_13 = arith.constant 0 : index
    %17 = vector.load %arg6[%c0_12, %c0_13] : memref<32x2xbf16, #tpu.memory_space<vmem>>, vector<32x2xbf16>
    %cst_14 = arith.constant dense<0.000000e+00> : vector<8x2xf32>
    %18 = tpu.matmul %16, %17, %cst_14 {dimension_numbers = #tpu.dot_dimension_numbers<[1], [0], [0], [1], [0, 0, 1, 1], [], []>} : vector<8x32xbf16>, vector<32x2xbf16>, vector<8x2xf32> -> vector<8x2xf32>
    %c0_15 = arith.constant 0 : index
    %c0_16 = arith.constant 0 : index
    %19 = vector.load %arg7[%c0_15, %c0_16] : memref<1x2xf32, #tpu.memory_space<vmem>>, vector<1x2xf32>
    %20 = vector.broadcast %19 : vector<1x2xf32> to vector<8x2xf32>
    %21 = arith.addf %18, %20 : vector<8x2xf32>
    %c0_17 = arith.constant 0 : index
    %c0_18 = arith.constant 0 : index
    %22 = vector.load %arg8[%c0_17, %c0_18] : memref<8x2xf32, #tpu.memory_space<vmem>>, vector<8x2xf32>
    tpu.vector_store %arg8[%c0_17, %c0_18], %21 {strides = array<i32>} : memref<8x2xf32, #tpu.memory_space<vmem>>, vector<8x2xf32>,
    return
  }
  func.func @transform_0(%arg0: i32) -> (i32, i32) {
    %c0_i32 = arith.constant 0 : i32
    %c0_i32_0 = arith.constant 0 : i32
    return %arg0, %c0_i32 : i32, i32
  }
  func.func @transform_1(%arg0: i32) -> (i32, i32) {
    %c0_i32 = arith.constant 0 : i32
    %c0_i32_0 = arith.constant 0 : i32
    %c0_i32_1 = arith.constant 0 : i32
    return %c0_i32, %c0_i32_0 : i32, i32
  }
  func.func @transform_2(%arg0: i32) -> (i32, i32) {
    %c0_i32 = arith.constant 0 : i32
    %c0_i32_0 = arith.constant 0 : i32
    %c0_i32_1 = arith.constant 0 : i32
    return %c0_i32, %c0_i32_0 : i32, i32
  }
  func.func @transform_3(%arg0: i32) -> (i32, i32) {
    %c0_i32 = arith.constant 0 : i32
    %c0_i32_0 = arith.constant 0 : i32
    %c0_i32_1 = arith.constant 0 : i32
    return %c0_i32, %c0_i32_0 : i32, i32
  }
  func.func @transform_4(%arg0: i32) -> (i32, i32) {
    %c0_i32 = arith.constant 0 : i32
    %c0_i32_0 = arith.constant 0 : i32
    %c0_i32_1 = arith.constant 0 : i32
    return %c0_i32, %c0_i32_0 : i32, i32
  }
  func.func @transform_5(%arg0: i32) -> (i32, i32) {
    %c0_i32 = arith.constant 0 : i32
    %c0_i32_0 = arith.constant 0 : i32
    %c0_i32_1 = arith.constant 0 : i32
    return %c0_i32, %c0_i32_0 : i32, i32
  }
  func.func @transform_6(%arg0: i32) -> (i32, i32) {
    %c0_i32 = arith.constant 0 : i32
    %c0_i32_0 = arith.constant 0 : i32
    %c0_i32_1 = arith.constant 0 : i32
    return %c0_i32, %c0_i32_0 : i32, i32
  }
  func.func @transform_7(%arg0: i32) -> (i32, i32) {
    %c0_i32 = arith.constant 0 : i32
    %c0_i32_0 = arith.constant 0 : i32
    return %arg0, %c0_i32 : i32, i32
  }
}

</mosaic_0001>

<bundles_post_ra>
// kernel: mushroom_classifier_forward.1
= control target key start
LH: loop header
LB: loop body
LE: loop exit
PB: predicated region body
PF: predicated region fallthrough
CT: control target
= control target key end

     0   :  { %vm48_vm0 = vcmask 261120   ;;  %vm103_vm1 = vcmask 523264   ;;  %vm158_vm2 = vcmask 15360   ;;  %s291_s1 = inlined_call_operand.vmem [shape: bf16[32,64], index: 1, kind: input, shape index: {}]   ;;  %s292_s3 = inlined_call_operand.vmem [shape: bf16[64,32], index: 3, kind: input, shape index: {}]   ;;  %s293_s2 = inlined_call_operand.vmem [shape: f32[1,64], index: 2, kind: input, shape index: {}]   ;;  %s294_s0 = inlined_call_operand.vmem [shape: bf16[8,32], index: 0, kind: input, shape index: {}]   ;;  %s295_s4 = inlined_call_operand.vmem [shape: f32[1,32], index: 4, kind: input, shape index: {}]   ;;  %s296_s6 = inlined_call_operand.vmem [shape: f32[1,2], index: 6, kind: input, shape index: {}]   ;;  %s297_s5 = inlined_call_operand.vmem [shape: bf16[32,2], index: 5, kind: input, shape index: {}]   ;;  %s298_s7 = inlined_call_operand.vmem [shape: f32[8,2], index: 7, kind: output, shape index: {}]  }
   0x1   :  { %v200_v0 = vld [vmem:[%s291_s1 + $0x8] sm:$0xff]  ;;  %v204_v1 = vld [vmem:[%s292_s3 + $0x18] sm:$0xff]  ;;  %v199_v2 = vld [vmem:[%s291_s1] sm:$0xff] }
   0x2   :  { %58 = vmatpush.bf16.msra.mxu0 %v200_v0  ;;  %111 = vmatpush.bf16.msra.mxu1 %v204_v1  ;;  %v203_v3 = vld [vmem:[%s292_s3 + $0x10] sm:$0xff]  ;;  %v27_v4 = vld [vmem:[%s294_s0] sm:$0xf]  ;;  %v202_v5 = vld [vmem:[%s292_s3 + $0x8] sm:$0xff] }
   0x3   :  { %v201_v6 = vld [vmem:[%s292_s3] sm:$0xff]  ;;  %v206_v13 = vld [vmem:[%s297_s5 + $0x8] sm:$0xff] }
   0x4   :  { %v207_v7 = vld [vmem:[%s293_s2] ss:$0 sm:$0xff]  ;;  %151 = vmatpush.bf16.msra.mxu2 %v206_v13 }
   0x5   :  { %v205_v14 = vld [vmem:[%s297_s5] sm:$0xff] }
   0x6   :  { %59 = vmatpush.bf16.msra.mxu0 %v199_v2  ;;  %112 = vmatpush.bf16.msra.mxu1 %v203_v3  ;;  %v208_v15 = vld [vmem:[%s295_s4] ss:$0 sm:$0xff] }
   0x7   :  { %v209_v21 = vld [vmem:[%s296_s6] ss:$0 sm:$0xff] }
   0x8   :  { %152 = vmatpush.bf16.msra.mxu2 %v205_v14 }
   0x9   :  { %172 = vmatmul.msk.bf16.vlgmr.msra.gmra.mxu0 %vm48_vm0, %v27_v4 }
   0xa   :  { %113 = vmatpush.bf16.msra.mxu1 %v202_v5 }
   0xe   :  { %114 = vmatpush.bf16.msra.mxu1 %v201_v6 }
  0x86   :  { %v61_v8 = vpop.f32.mrf.mxu0 }
  0x87   :  { %v62_v9 = vadd.f32 %v207_v7, %v61_v8 }
  0x89   :  { %v65_v10 = vmax.f32 %v62_v9, 0.0 }
  0x8b   :  { %v66_v11 = vpack.c.bf16 %v65_v10, %v65_v10 }
  0x8d   :  { %189 = vmatmul.msk.bf16.vlgmr.msra.gmra.mxu1 %vm103_vm1, %v66_v11 }
  0x8e   :  { %v63_v12 = vpop.f32.mrf.mxu0 }
 0x10a   :  { %v116_v16 = vpop.f32.mrf.mxu1 }
 0x10b   :  { %v117_v17 = vadd.f32 %v208_v15, %v116_v16 }
 0x10d   :  { %v120_v18 = vmax.f32 %v117_v17, 0.0 }
 0x10f   :  { %v121_v19 = vpack.c.bf16 %v120_v18, %v120_v18 }
 0x111   :  { %198 = vmatmul.msk.bf16.vlgmr.msra.gmra.mxu2 %vm48_vm0, %v121_v19 }
 0x112   :  { %v118_v20 = vpop.f32.mrf.mxu1 }
 0x194   :  { %v154_v22 = vpop.f32.mrf.mxu2 }
 0x195   :  { %v155_v23 = vadd.f32 %v209_v21, %v154_v22 }
 0x197   :  { %159 = vst.msk [vmem:[%s298_s7] sm:$0xff] %vm158_vm2, %v155_v23 }
 0x19c   :  { %v156_v24 = vpop.f32.mrf.mxu2 }

</bundles_post_ra>
